<compile_context>
chip_gen: v7x
topology: tpu7x:2x2x1
jax: 0.10.0
libtpu: 0.0.40
codegen_flags: <defaults>
</compile_context>

<pallas_src>
import functools

import jax
import jax.numpy as jnp
import numpy as np
from jax import lax
from jax.experimental import pallas as pl
from jax.experimental.pallas import tpu as pltpu


# ---------------------------------------------------------------------------
# Pallas kernel: one batch element per grid step.
# ---------------------------------------------------------------------------
def _projector_kernel(x_ref, w_ref, shift_ref, gw_ref, gb_ref, o_ref,
                      patch_ref, *, H, W, Cin_p):
    # x_ref:     (1, Cin_p, L)        vertically padded, flattened bf16 input slab
    # w_ref:     (Cout, 9*Cin_p)      BN-scale-folded conv taps (bf16), tap = ky*3+kx
    # shift_ref: (Cout, 1)            folded BatchNorm shift (f32)
    # gw_ref:    (Cout, Cout)         gate weight (f32)
    # gb_ref:    (Cout, 1)            gate bias (f32)
    # o_ref:     (1, Cout, HW)        lane-dense f32 output (NCHW after reshape)
    # patch_ref: (9*Cin_p, HW) bf16   VMEM scratch for the im2col patch
    HW = H * W
    xf = x_ref[0]                                        # (Cin_p, L) bf16

    # Horizontal-wrap lane masks, generated in-kernel (trivial VPU iota+compare).
    col = lax.broadcasted_iota(jnp.int32, (1, HW), 1) % W
    mask_l = col != 0                                    # dx=-1 invalid at w == 0
    mask_r = col != (W - 1)                              # dx=+1 invalid at w == W-1
    zero = jnp.zeros((), xf.dtype)

    # In-kernel im2col: write each shifted slice into its sublane band of the
    # patch scratch (masking the wrapped columns for kx=0 / kx=2 as we write).
    for ky in range(3):
        for kx in range(3):
            tap = ky * 3 + kx
            start = ky * W + kx                          # static lane offset in slab
            xs = xf[:, start:start + HW]                 # (Cin_p, HW)
            if kx == 0:
                xs = jnp.where(mask_l, xs, zero)
            elif kx == 2:
                xs = jnp.where(mask_r, xs, zero)
            patch_ref[tap * Cin_p:(tap + 1) * Cin_p, :] = xs

    # Single bf16 MXU matmul accumulates all 9 taps over K = 9*Cin_p (f32 acc).
    y = jnp.dot(w_ref[...], patch_ref[...],
                preferred_element_type=jnp.float32)      # (Cout, HW)
    y = y + shift_ref[...]                               # BatchNorm shift (scale folded)

    # Gate: reduce first, then matvec:  t = tanh(Gw @ mean_hw(|y|) + gb).
    s = jnp.mean(jnp.abs(y), axis=1, keepdims=True)      # (Cout, 1), XLU lane-reduce
    t = jnp.tanh(jnp.dot(gw_ref[...], s,
                         preferred_element_type=jnp.float32) + gb_ref[...])

    o_ref[0] = (y * t).astype(o_ref.dtype)
    # TODO(synk): training-mode gate_loss (L1 norm of t) is a module side effect,
    # not part of the returned tensor; omitted (eval mode sets it to None).


# ---------------------------------------------------------------------------
# Wrapper (glue: BN folding, channel/lane padding, slab build, pallas_call).
# ---------------------------------------------------------------------------
def projector_forward(x_nchw, params, *, pad=1):
    eps = 1e-5
    w_hwio = params["conv_w"]                            # (K, K, Cin, Cout)
    K, _, Cin, Cout = w_hwio.shape
    assert K == 3 and pad == 1, "projector uses a 3x3 conv with pad=1"

    x = x_nchw.astype(jnp.float32)                       # NCHW, no transpose needed
    B, _, H, W = x.shape
    HW = H * W

    Cin_p = int(np.ceil(Cin / 8) * 8)                    # sublane-aligned channel pad

    # Fold BatchNorm (inference) scale into the conv weights; keep shift separate.
    inv_std = 1.0 / jnp.sqrt(params["bn_var"] + eps)
    scale = params["bn_gamma"] * inv_std                                 # (Cout,)
    shift = (params["bn_beta"] - params["bn_mean"] * scale).reshape(Cout, 1)

    w = jnp.transpose(w_hwio, (0, 1, 3, 2))              # (ky, kx, Cout, Cin)
    w = w * scale.reshape(1, 1, Cout, 1)
    w = jnp.pad(w, ((0, 0), (0, 0), (0, 0), (0, Cin_p - Cin)))           # pad Cin
    # -> (Cout, 9*Cin_p) with tap = ky*3 + kx, matching the kernel's patch layout.
    w_flat = jnp.transpose(w.reshape(K * K, Cout, Cin_p), (1, 0, 2))
    w_flat = w_flat.reshape(Cout, K * K * Cin_p).astype(jnp.bfloat16)

    gw = params["gate_w"].astype(jnp.float32)            # (Cout, Cout)
    gb = params["gate_b"].reshape(Cout, 1).astype(jnp.float32)

    # Vertically pad, flatten spatial dims, then pad one element at the left (and
    # round L up to a multiple of 128 on the right) so every 3x3 tap (ky, kx) is
    # the contiguous static lane slice [ky*W + kx : ky*W + kx + H*W] of the slab.
    xv = jnp.pad(x, ((0, 0), (0, Cin_p - Cin), (pad, pad), (0, 0)))      # (B,Cin_p,H+2,W)
    xf = xv.reshape(B, Cin_p, (H + 2 * pad) * W)
    L_raw = (H + 2 * pad) * W + 2
    L = int(np.ceil(L_raw / 128) * 128)                  # lane-aligned slab length
    xf = jnp.pad(xf, ((0, 0), (0, 0), (1, L - L_raw + 1))).astype(jnp.bfloat16)

    kernel = functools.partial(_projector_kernel, H=H, W=W, Cin_p=Cin_p)
    out = pl.pallas_call(
        kernel,
        out_shape=jax.ShapeDtypeStruct((B, Cout, HW), jnp.float32),
        grid_spec=pltpu.PrefetchScalarGridSpec(
            num_scalar_prefetch=0,
            grid=(B,),
            in_specs=[
                pl.BlockSpec((1, Cin_p, L), lambda b: (b, 0, 0)),         # input slab
                pl.BlockSpec((Cout, K * K * Cin_p), lambda b: (0, 0)),    # conv taps
                pl.BlockSpec((Cout, 1), lambda b: (0, 0)),                # BN shift
                pl.BlockSpec((Cout, Cout), lambda b: (0, 0)),             # gate W
                pl.BlockSpec((Cout, 1), lambda b: (0, 0)),                # gate b
            ],
            out_specs=pl.BlockSpec((1, Cout, HW), lambda b: (b, 0, 0)),
            scratch_shapes=[pltpu.VMEM((K * K * Cin_p, HW), jnp.bfloat16)],
        ),
        compiler_params=pltpu.CompilerParams(
            dimension_semantics=("parallel",),   # batch shards across TCs on v7x
        ),
    )(xf, w_flat, shift, gw, gb)

    return out.reshape(B, Cout, H, W)                    # already NCHW: reshape only


# ---------------------------------------------------------------------------
# Pure-JAX reference for verification.
# ---------------------------------------------------------------------------
def projector_reference(x_nchw, params, *, pad=1):
    eps = 1e-5
    w_hwio = params["conv_w"]
    y = jax.lax.conv_general_dilated(
        x_nchw.astype(jnp.float32), w_hwio,
        window_strides=(1, 1), padding=((pad, pad), (pad, pad)),
        dimension_numbers=("NCHW", "HWIO", "NCHW"))
    scale = params["bn_gamma"] / jnp.sqrt(params["bn_var"] + eps)
    shift = params["bn_beta"] - params["bn_mean"] * scale
    y = y * scale[None, :, None, None] + shift[None, :, None, None]
    s = jnp.mean(jnp.abs(y), axis=(2, 3))                             # (B, Cout)
    t = jnp.tanh(s @ params["gate_w"].T + params["gate_b"])
    return y * t[:, :, None, None]


# ---------------------------------------------------------------------------
# Deterministic parameter init (synthetic; mirrors the module's shapes/inits).
# ---------------------------------------------------------------------------
def make_params(key, in_channel, out_channel, ksize=3):
    k_conv, k_gamma, k_beta, k_mean, k_var, k_gate = jax.random.split(key, 6)
    fan_in_conv = in_channel * ksize * ksize
    conv_w = jax.random.normal(k_conv, (ksize, ksize, in_channel, out_channel),
                               jnp.float32) * np.sqrt(2.0 / fan_in_conv)
    bn_gamma = 1.0 + 0.1 * jax.random.normal(k_gamma, (out_channel,), jnp.float32)
    bn_beta = 0.1 * jax.random.normal(k_beta, (out_channel,), jnp.float32)
    bn_mean = 0.1 * jax.random.normal(k_mean, (out_channel,), jnp.float32)
    bn_var = jax.random.uniform(k_var, (out_channel,), jnp.float32, 0.5, 1.5)
    # gate: kaiming_normal_ weight (fan_in = out_channel), bias = 0.5
    gate_w = jax.random.normal(k_gate, (out_channel, out_channel),
                               jnp.float32) * np.sqrt(2.0 / out_channel)
    gate_b = jnp.full((out_channel,), 0.5, jnp.float32)
    return dict(conv_w=conv_w, bn_gamma=bn_gamma, bn_beta=bn_beta,
                bn_mean=bn_mean, bn_var=bn_var, gate_w=gate_w, gate_b=gate_b)


if __name__ == "__main__":
    B, Cin, Cout, H, W = 2, 4, 8, 16, 16

    key = jax.random.PRNGKey(0)
    k_x, k_p = jax.random.split(key)
    x = jax.random.normal(k_x, (B, Cin, H, W), jnp.float32)      # PyTorch NCHW input
    params = make_params(k_p, Cin, Cout)

    out = jax.block_until_ready(projector_forward(x, params))
    ref = jax.block_until_ready(projector_reference(x, params))

    assert out.shape == (B, Cout, H, W), out.shape
    # bf16 MXU operands -> loosen tolerance vs the f32 reference.
    np.testing.assert_allclose(np.asarray(out), np.asarray(ref),
                               rtol=2e-2, atol=2e-2)
    print("KERNEL_OK")
</pallas_src>

<mosaic_0001>
module attributes {stable_mosaic.version = 11 : i64} {
  func.func @_projector_kernel(%arg0: i32, %arg1: memref<1x8x384xbf16, #tpu.memory_space<vmem>>, %arg2: memref<8x72xbf16, #tpu.memory_space<vmem>>, %arg3: memref<8x1xf32, #tpu.memory_space<vmem>>, %arg4: memref<8x8xf32, #tpu.memory_space<vmem>>, %arg5: memref<8x1xf32, #tpu.memory_space<vmem>>, %arg6: memref<1x8x256xf32, #tpu.memory_space<vmem>>, %arg7: memref<72x256xbf16, #tpu.memory_space<vmem>>) attributes {dimension_semantics = [#tpu.dimension_semantics<parallel>], iteration_bounds = array<i64: 2>, scalar_prefetch = 0 : i64, scratch_operands = 1 : i64, tpu.core_type = #tpu.core_type<tc>, window_params = [{transform_indices = @transform_0, window_bounds = array<i64: 1, 8, 384>}, {pipeline_mode = #tpu.pipeline_mode<synchronous>, transform_indices = @transform_1, window_bounds = array<i64: 8, 72>}, {pipeline_mode = #tpu.pipeline_mode<synchronous>, transform_indices = @transform_2, window_bounds = array<i64: 8, 1>}, {pipeline_mode = #tpu.pipeline_mode<synchronous>, transform_indices = @transform_3, window_bounds = array<i64: 8, 8>}, {pipeline_mode = #tpu.pipeline_mode<synchronous>, transform_indices = @transform_4, window_bounds = array<i64: 8, 1>}, {transform_indices = @transform_5, window_bounds = array<i64: 1, 8, 256>}]} {
    %c0 = arith.constant 0 : index
    %c0_0 = arith.constant 0 : index
    %c0_1 = arith.constant 0 : index
    %0 = vector.load %arg1[%c0, %c0_0, %c0_1] : memref<1x8x384xbf16, #tpu.memory_space<vmem>>, vector<1x8x384xbf16>
    %1 = vector.shape_cast %0 : vector<1x8x384xbf16> to vector<8x384xbf16>
    %2 = tpu.iota {dimensions = array<i32: 1>} : vector<1x256xi32>
    %c16_i32 = arith.constant 16 : i32
    %c0_i32 = arith.constant 0 : i32
    %3 = arith.cmpi eq, %c16_i32, %c0_i32 : i32
    %c1_i32 = arith.constant 1 : i32
    %4 = arith.select %3, %c1_i32, %c16_i32 : i32
    %5 = vector.broadcast %4 : i32 to vector<1x256xi32>
    %6 = arith.remsi %2, %5 : vector<1x256xi32>
    %c0_i32_2 = arith.constant 0 : i32
    %7 = vector.broadcast %c0_i32_2 : i32 to vector<1x256xi32>
    %8 = arith.cmpi ne, %6, %7 : vector<1x256xi32>
    %c0_i32_3 = arith.constant 0 : i32
    %9 = vector.broadcast %c0_i32_3 : i32 to vector<1x256xi32>
    %10 = arith.cmpi slt, %6, %9 : vector<1x256xi32>
    %c0_i32_4 = arith.constant 0 : i32
    %11 = arith.cmpi slt, %4, %c0_i32_4 : i32
    %12 = vector.broadcast %11 : i1 to vector<1x256xi1>
    %13 = vector.broadcast %12 : vector<1x256xi1> to vector<1x256xi1>
    %14 = arith.xori %10, %13 : vector<1x256xi1>
    %15 = arith.andi %14, %8 : vector<1x256xi1>
    %16 = vector.broadcast %4 : i32 to vector<1x256xi32>
    %17 = arith.addi %6, %16 : vector<1x256xi32>
    %18 = arith.select %15, %17, %6 : vector<1x256xi1>, vector<1x256xi32>
    %c0_i32_5 = arith.constant 0 : i32
    %19 = vector.broadcast %c0_i32_5 : i32 to vector<1x256xi32>
    %20 = arith.cmpi ne, %18, %19 : vector<1x256xi32>
    %c15_i32 = arith.constant 15 : i32
    %21 = vector.broadcast %c15_i32 : i32 to vector<1x256xi32>
    %22 = arith.cmpi ne, %18, %21 : vector<1x256xi32>
    %23 = vector.extract_strided_slice %1 {offsets = [0, 0], sizes = [8, 256], strides = [1, 1]} : vector<8x384xbf16> to vector<8x256xbf16>
    %cst = arith.constant 0.000000e+00 : bf16
    %24 = vector.shape_cast %20 : vector<1x256xi1> to vector<1x256xi1>
    %25 = vector.broadcast %24 : vector<1x256xi1> to vector<8x256xi1>
    %26 = vector.broadcast %cst : bf16 to vector<8x256xbf16>
    %27 = arith.select %25, %23, %26 : vector<8x256xi1>, vector<8x256xbf16>
    %c0_6 = arith.constant 0 : index
    %c0_7 = arith.constant 0 : index
    %28 = vector.load %arg7[%c0_6, %c0_7] : memref<72x256xbf16, #tpu.memory_space<vmem>>, vector<8x256xbf16>
    tpu.vector_store %arg7[%c0_6, %c0_7], %27 {strides = array<i32>} : memref<72x256xbf16, #tpu.memory_space<vmem>>, vector<8x256xbf16>,
    %29 = vector.extract_strided_slice %1 {offsets = [0, 1], sizes = [8, 256], strides = [1, 1]} : vector<8x384xbf16> to vector<8x256xbf16>
    %c8 = arith.constant 8 : index
    %c0_8 = arith.constant 0 : index
    %30 = vector.load %arg7[%c8, %c0_8] : memref<72x256xbf16, #tpu.memory_space<vmem>>, vector<8x256xbf16>
    tpu.vector_store %arg7[%c8, %c0_8], %29 {strides = array<i32>} : memref<72x256xbf16, #tpu.memory_space<vmem>>, vector<8x256xbf16>,
    %31 = vector.extract_strided_slice %1 {offsets = [0, 2], sizes = [8, 256], strides = [1, 1]} : vector<8x384xbf16> to vector<8x256xbf16>
    %cst_9 = arith.constant 0.000000e+00 : bf16
    %32 = vector.shape_cast %22 : vector<1x256xi1> to vector<1x256xi1>
    %33 = vector.broadcast %32 : vector<1x256xi1> to vector<8x256xi1>
    %34 = vector.broadcast %cst_9 : bf16 to vector<8x256xbf16>
    %35 = arith.select %33, %31, %34 : vector<8x256xi1>, vector<8x256xbf16>
    %c16 = arith.constant 16 : index
    %c0_10 = arith.constant 0 : index
    %36 = vector.load %arg7[%c16, %c0_10] : memref<72x256xbf16, #tpu.memory_space<vmem>>, vector<8x256xbf16>
    tpu.vector_store %arg7[%c16, %c0_10], %35 {strides = array<i32>} : memref<72x256xbf16, #tpu.memory_space<vmem>>, vector<8x256xbf16>,
    %37 = vector.extract_strided_slice %1 {offsets = [0, 16], sizes = [8, 256], strides = [1, 1]} : vector<8x384xbf16> to vector<8x256xbf16>
    %cst_11 = arith.constant 0.000000e+00 : bf16
    %38 = vector.shape_cast %20 : vector<1x256xi1> to vector<1x256xi1>
    %39 = vector.broadcast %38 : vector<1x256xi1> to vector<8x256xi1>
    %40 = vector.broadcast %cst_11 : bf16 to vector<8x256xbf16>
    %41 = arith.select %39, %37, %40 : vector<8x256xi1>, vector<8x256xbf16>
    %c24 = arith.constant 24 : index
    %c0_12 = arith.constant 0 : index
    %42 = vector.load %arg7[%c24, %c0_12] : memref<72x256xbf16, #tpu.memory_space<vmem>>, vector<8x256xbf16>
    tpu.vector_store %arg7[%c24, %c0_12], %41 {strides = array<i32>} : memref<72x256xbf16, #tpu.memory_space<vmem>>, vector<8x256xbf16>,
    %43 = vector.extract_strided_slice %1 {offsets = [0, 17], sizes = [8, 256], strides = [1, 1]} : vector<8x384xbf16> to vector<8x256xbf16>
    %c32 = arith.constant 32 : index
    %c0_13 = arith.constant 0 : index
    %44 = vector.load %arg7[%c32, %c0_13] : memref<72x256xbf16, #tpu.memory_space<vmem>>, vector<8x256xbf16>
    tpu.vector_store %arg7[%c32, %c0_13], %43 {strides = array<i32>} : memref<72x256xbf16, #tpu.memory_space<vmem>>, vector<8x256xbf16>,
    %45 = vector.extract_strided_slice %1 {offsets = [0, 18], sizes = [8, 256], strides = [1, 1]} : vector<8x384xbf16> to vector<8x256xbf16>
    %cst_14 = arith.constant 0.000000e+00 : bf16
    %46 = vector.shape_cast %22 : vector<1x256xi1> to vector<1x256xi1>
    %47 = vector.broadcast %46 : vector<1x256xi1> to vector<8x256xi1>
    %48 = vector.broadcast %cst_14 : bf16 to vector<8x256xbf16>
    %49 = arith.select %47, %45, %48 : vector<8x256xi1>, vector<8x256xbf16>
    %c40 = arith.constant 40 : index
    %c0_15 = arith.constant 0 : index
    %50 = vector.load %arg7[%c40, %c0_15] : memref<72x256xbf16, #tpu.memory_space<vmem>>, vector<8x256xbf16>
    tpu.vector_store %arg7[%c40, %c0_15], %49 {strides = array<i32>} : memref<72x256xbf16, #tpu.memory_space<vmem>>, vector<8x256xbf16>,
    %51 = vector.extract_strided_slice %1 {offsets = [0, 32], sizes = [8, 256], strides = [1, 1]} : vector<8x384xbf16> to vector<8x256xbf16>
    %cst_16 = arith.constant 0.000000e+00 : bf16
    %52 = vector.shape_cast %20 : vector<1x256xi1> to vector<1x256xi1>
    %53 = vector.broadcast %52 : vector<1x256xi1> to vector<8x256xi1>
    %54 = vector.broadcast %cst_16 : bf16 to vector<8x256xbf16>
    %55 = arith.select %53, %51, %54 : vector<8x256xi1>, vector<8x256xbf16>
    %c48 = arith.constant 48 : index
    %c0_17 = arith.constant 0 : index
    %56 = vector.load %arg7[%c48, %c0_17] : memref<72x256xbf16, #tpu.memory_space<vmem>>, vector<8x256xbf16>
    tpu.vector_store %arg7[%c48, %c0_17], %55 {strides = array<i32>} : memref<72x256xbf16, #tpu.memory_space<vmem>>, vector<8x256xbf16>,
    %57 = vector.extract_strided_slice %1 {offsets = [0, 33], sizes = [8, 256], strides = [1, 1]} : vector<8x384xbf16> to vector<8x256xbf16>
    %c56 = arith.constant 56 : index
    %c0_18 = arith.constant 0 : index
    %58 = vector.load %arg7[%c56, %c0_18] : memref<72x256xbf16, #tpu.memory_space<vmem>>, vector<8x256xbf16>
    tpu.vector_store %arg7[%c56, %c0_18], %57 {strides = array<i32>} : memref<72x256xbf16, #tpu.memory_space<vmem>>, vector<8x256xbf16>,
    %59 = vector.extract_strided_slice %1 {offsets = [0, 34], sizes = [8, 256], strides = [1, 1]} : vector<8x384xbf16> to vector<8x256xbf16>
    %cst_19 = arith.constant 0.000000e+00 : bf16
    %60 = vector.shape_cast %22 : vector<1x256xi1> to vector<1x256xi1>
    %61 = vector.broadcast %60 : vector<1x256xi1> to vector<8x256xi1>
    %62 = vector.broadcast %cst_19 : bf16 to vector<8x256xbf16>
    %63 = arith.select %61, %59, %62 : vector<8x256xi1>, vector<8x256xbf16>
    %c64 = arith.constant 64 : index
    %c0_20 = arith.constant 0 : index
    %64 = vector.load %arg7[%c64, %c0_20] : memref<72x256xbf16, #tpu.memory_space<vmem>>, vector<8x256xbf16>
    tpu.vector_store %arg7[%c64, %c0_20], %63 {strides = array<i32>} : memref<72x256xbf16, #tpu.memory_space<vmem>>, vector<8x256xbf16>,
    %c0_21 = arith.constant 0 : index
    %c0_22 = arith.constant 0 : index
    %65 = vector.load %arg2[%c0_21, %c0_22] : memref<8x72xbf16, #tpu.memory_space<vmem>>, vector<8x72xbf16>
    %c0_23 = arith.constant 0 : index
    %c0_24 = arith.constant 0 : index
    %66 = vector.load %arg7[%c0_23, %c0_24] : memref<72x256xbf16, #tpu.memory_space<vmem>>, vector<72x256xbf16>
    %cst_25 = arith.constant dense<0.000000e+00> : vector<8x256xf32>
    %67 = tpu.matmul %65, %66, %cst_25 {dimension_numbers = #tpu.dot_dimension_numbers<[1], [0], [0], [1], [0, 0, 1, 1], [], []>} : vector<8x72xbf16>, vector<72x256xbf16>, vector<8x256xf32> -> vector<8x256xf32>
    %c0_26 = arith.constant 0 : index
    %c0_27 = arith.constant 0 : index
    %68 = vector.load %arg3[%c0_26, %c0_27] : memref<8x1xf32, #tpu.memory_space<vmem>>, vector<8x1xf32>
    %69 = vector.broadcast %68 : vector<8x1xf32> to vector<8x256xf32>
    %70 = arith.addf %67, %69 : vector<8x256xf32>
    %71 = math.absf %70 : vector<8x256xf32>
    %cst_28 = arith.constant dense<0.000000e+00> : vector<8xf32>
    %72 = vector.multi_reduction <add>, %71, %cst_28 [1] : vector<8x256xf32> to vector<8xf32>
    %73 = vector.shape_cast %72 : vector<8xf32> to vector<8x1xf32>
    %cst_29 = arith.constant 2.560000e+02 : f32
    %74 = vector.broadcast %cst_29 : f32 to vector<8x1xf32>
    %75 = arith.divf %73, %74 : vector<8x1xf32>
    %c0_30 = arith.constant 0 : index
    %c0_31 = arith.constant 0 : index
    %76 = vector.load %arg4[%c0_30, %c0_31] : memref<8x8xf32, #tpu.memory_space<vmem>>, vector<8x8xf32>
    %cst_32 = arith.constant dense<0.000000e+00> : vector<8x1xf32>
    %77 = tpu.matmul %76, %75, %cst_32 {dimension_numbers = #tpu.dot_dimension_numbers<[1], [0], [0], [1], [0, 0, 1, 1], [], []>} : vector<8x8xf32>, vector<8x1xf32>, vector<8x1xf32> -> vector<8x1xf32>
    %c0_33 = arith.constant 0 : index
    %c0_34 = arith.constant 0 : index
    %78 = vector.load %arg5[%c0_33, %c0_34] : memref<8x1xf32, #tpu.memory_space<vmem>>, vector<8x1xf32>
    %79 = arith.addf %77, %78 : vector<8x1xf32>
    %80 = math.tanh %79 : vector<8x1xf32>
    %81 = vector.broadcast %80 : vector<8x1xf32> to vector<8x256xf32>
    %82 = arith.mulf %70, %81 : vector<8x256xf32>
    %c0_35 = arith.constant 0 : index
    %c0_36 = arith.constant 0 : index
    %c0_37 = arith.constant 0 : index
    %83 = vector.load %arg6[%c0_35, %c0_36, %c0_37] : memref<1x8x256xf32, #tpu.memory_space<vmem>>, vector<1x8x256xf32>
    %84 = vector.shape_cast %83 : vector<1x8x256xf32> to vector<8x256xf32>
    %85 = vector.shape_cast %82 : vector<8x256xf32> to vector<1x8x256xf32>
    tpu.vector_store %arg6[%c0_35, %c0_36, %c0_37], %85 {strides = array<i32>} : memref<1x8x256xf32, #tpu.memory_space<vmem>>, vector<1x8x256xf32>,
    return
  }
  func.func @transform_0(%arg0: i32) -> (i32, i32, i32) {
    %c0_i32 = arith.constant 0 : i32
    %c0_i32_0 = arith.constant 0 : i32
    %c0_i32_1 = arith.constant 0 : i32
    return %arg0, %c0_i32, %c0_i32_0 : i32, i32, i32
  }
  func.func @transform_1(%arg0: i32) -> (i32, i32) {
    %c0_i32 = arith.constant 0 : i32
    %c0_i32_0 = arith.constant 0 : i32
    %c0_i32_1 = arith.constant 0 : i32
    return %c0_i32, %c0_i32_0 : i32, i32
  }
  func.func @transform_2(%arg0: i32) -> (i32, i32) {
    %c0_i32 = arith.constant 0 : i32
    %c0_i32_0 = arith.constant 0 : i32
    %c0_i32_1 = arith.constant 0 : i32
    return %c0_i32, %c0_i32_0 : i32, i32
  }
  func.func @transform_3(%arg0: i32) -> (i32, i32) {
    %c0_i32 = arith.constant 0 : i32
    %c0_i32_0 = arith.constant 0 : i32
    %c0_i32_1 = arith.constant 0 : i32
    return %c0_i32, %c0_i32_0 : i32, i32
  }
  func.func @transform_4(%arg0: i32) -> (i32, i32) {
    %c0_i32 = arith.constant 0 : i32
    %c0_i32_0 = arith.constant 0 : i32
    %c0_i32_1 = arith.constant 0 : i32
    return %c0_i32, %c0_i32_0 : i32, i32
  }
  func.func @transform_5(%arg0: i32) -> (i32, i32, i32) {
    %c0_i32 = arith.constant 0 : i32
    %c0_i32_0 = arith.constant 0 : i32
    %c0_i32_1 = arith.constant 0 : i32
    return %arg0, %c0_i32, %c0_i32_0 : i32, i32, i32
  }
}

</mosaic_0001>

<bundles_post_ra>
// kernel: tpu_custom_call.1
= control target key start
LH: loop header
LB: loop body
LE: loop exit
PB: predicated region body
PF: predicated region fallthrough
CT: control target
= control target key end

     0   :  { %10 = vsyncpa [#allocation4], 0  ;;  %s1214_s0 = inlined_call_operand.hbm [shape: bf16[2,8,384], index: 0, kind: input, shape index: {}]   ;;  %s1215_s1 = inlined_call_operand.vmem [shape: bf16[8,72], index: 1, kind: input, shape index: {}]   ;;  %s1216_s2 = inlined_call_operand.vmem [shape: f32[8,1], index: 2, kind: input, shape index: {}]   ;;  %s1217_s3 = inlined_call_operand.vmem [shape: f32[8,8], index: 3, kind: input, shape index: {}]   ;;  %s1218_s4 = inlined_call_operand.vmem [shape: f32[8,1], index: 4, kind: input, shape index: {}]   ;;  %s1219_s5 = inlined_call_operand.hbm [shape: f32[2,8,256], index: 5, kind: output, shape index: {}]  }
   0x1   :  { %12 = vsyncpa [#allocation4 + $0x1], 0 }
   0x2   :  { %13 = vsyncpa [#allocation5], 0 }
   0x3   :  { %15 = vsyncpa [#allocation5 + $0x1], 0  ;;  %s975_s18 = smov 0   ;;  %s977_s19 = smov 0  }
   0x4   :  { %s979_s20 = smov 0   ;;  %s981_s21 = smov 0  }
   0x5 LB: > { %s996_s22 = sadd.s32 4294967295, %s925_s21   ;;  %s728_s23 = sadd.s32 4294967294, %s925_s21   ;;  %s925_s21 = sphi %s981_s21, %s1241_s21   ;;  %s921_s20 = sphi %s979_s20, %s1240_s20   ;;  %s917_s19 = sphi %s977_s19, %s1239_s19   ;;  %s913_s18 = sphi %s975_s18, %s1238_s18  }
   0x6   : > { %s1000_s24 = sadd.s32 1, %s925_s21   ;;  %s28_s25 = sadd.s32 1, %s921_s20 }
   0x7   : > { %s25_s26 = ssub.s32 %s925_s21, %s1000_s24  ;;  %p35_p0 = scmp.ne.s32.totalorder %s921_s20, %s917_s19 }
   0x8   : > { %p26_p1 = scmp.eq.s32.totalorder %s25_s26, 0  ;;  %p36_p2 = scmp.eq.s32.totalorder %s925_s21, 0 }
   0x9   : > { %p41_p3 = scmp.ne.s32.totalorder %s917_s19, %s913_s18  ;;  %p42_p4 = scmp.eq.s32.totalorder %s996_s22, 0 }
   0xa   : > { %s1012_s27 = scalar_select %p26_p1, %s921_s20, %s28_s25  }
   0xb   : > { %p37_p5 = por %p36_p2, %p35_p0  ;;  %p1014_p6 = por %p42_p4, %p41_p3 }
   0xc   : > { %p149_p7 = scmp.eq.s32.totalorder %s996_s22, 1  ;;  %p155_p8 = scmp.eq.s32.totalorder %s728_s23, 1 }
   0xd   : > { %p775_p10 = scmp.lt.s32.totalorder %s925_s21, 2  ;;  %s187_s6 = sand.u32 1, %s921_s20  }
   0xe   : > { %p1021_p11 = por %p149_p7, %p35_p0  ;;  %p1025_p12 = por %p155_p8, %p41_p3 }
   0xf   : > { %s761_s7 = smul.u32 192, %s925_s21  ;;  %p1036_p13 = pnand %p775_p10, %p37_p5 }
  0x10   : > { %s1222_s29 = scalar_select %p1021_p11, 1, 0 }
  0x11   : > { %s1223_s30 = scalar_select %p1025_p12, 1, 0 }
  0x12   : > { %s760_s8 = smul.u32 12, %s187_s6  ;;  %s1034_s11 = scalar_lea.hbm %s1214_s0, %s761_s7 }
  0x13   : > { %s188_s15 = scalar_lea.sflag [#allocation4], %s187_s6  ;;  %s829_s16 = scalar_lea.hbm %s1034_s11, 192 }
  0x14   : > { %s191_s13 = scalar_lea.vmem [#allocation3], %s760_s8  ;;  %p830_p2 = scmp.ne.s32.totalorder %s1034_s11, %s829_s16 }
  0x15   : > { %s199_s14 = sshll.u32 %s191_s13, 4  ;;  %p831_p3 = pneg %p1036_p13  ;;  %s1041_s14 = int_to_ptr.vmem [resolvable:$true] %s199_s14 }
  0x16   : > { %s834_s25 = scalar_lea.hbm %s1214_s0, 384  ;;  %p835_p7 = scmp.lt.u32.totalorder %s1034_s11, %s1214_s0 }
  0x17   : > { %p832_p4 = pnand %p831_p3, %p830_p2  ;;  %p836_p8 = scmp.lt.u32.totalorder %s834_s25, %s829_s16 }
  0x18   : > { %p838_p9 = scmp.lt.u32.totalorder %s829_s16, %s1034_s11 }
  0x19   : > { %p833_p5 = pneg %p832_p4  ;;  %p837_p10 = por %p836_p8, %p835_p7 }
  0x1b   : > { %p839_p0 = por %p838_p9, %p837_p10 }
  0x1d   : > { %p840_p1 = pnand %p839_p0, %p833_p5 }
  0x1f   : > { %843 = shalt.err (!%p840_p1)
}
  0x20   : > { %s844_s6 = scalar_lea.vmem %s1041_s14, 192  ;;  %s927_s8 = smov [#allocation3]  }
  0x21   : > { %p845_p2 = scmp.ne.s32.totalorder %s1041_s14, %s844_s6  ;;  %s849_s9 = sshll.u32 %s927_s8, 4  ;;  %s850_s9 = int_to_ptr.vmem [resolvable:$false] %s849_s9 }
  0x22   : > { %s851_s10 = scalar_lea.vmem %s850_s9, 384  ;;  %p852_p11 = scmp.lt.s32.totalorder %s1041_s14, %s850_s9 }
  0x23   : > { %p847_p4 = pnand %p845_p2, %p831_p3  ;;  %p853_p7 = scmp.lt.s32.totalorder %s851_s10, %s844_s6 }
  0x25   : > { %p848_p12 = pneg %p847_p4  ;;  %p854_p8 = por %p853_p7, %p852_p11 }
  0x27   : > { %p855_p9 = pnand %p854_p8, %p848_p12 }
  0x29   : > { %858 = shalt.err (!%p855_p9)
}
  0x2a   : > { %770 = dma.hbm_to_vmem [thread:$0]  (!%p1036_p13), %s1034_s11, 192, %s1041_s14, %s188_s15  }
  0x2b   : > { %p1225_p0 = scmp.lt.s32.totalorder %s925_s21, 3  ;;  %p1226_p1 = scmp.ge.s32.totalorder %s925_s21, 1 }
  0x2d   : > { %p205_p3 = pnand %p1226_p1, %p1225_p0 }
  0x2e   : > { %s1074_s13 = sand.u32 (!%p205_p3), 1, %s917_s19   ;;  %v246_v0 = vlaneseq (!%p205_p3) }
  0x2f   : > { %208 = sbr.rel (%p205_p3) target bundleno = 1058 (0x422), region = 40  ;;  %s211_s17 = scalar_lea.sflag (!%p205_p3), [#allocation4], %s1074_s13 }
  0x30   : > { %s762_s16 = smul.u32 (!%p205_p3), 12, %s1074_s13 }
  0x32   : > { %s1078_s23 = scalar_lea.vmem (!%p205_p3), [#allocation3], %s762_s16 }
  0x36   : > { %904 = dma.done.wait (%p1014_p6), %s211_s17, 192  }
  0x37   : > { %906 = vsyncadd (%p1014_p6), %s211_s17, 4294967104  ;;  %v928_v1 = vmov 0   ;;  %v247_v2 = vand.u32 127, %v246_v0  ;;  %s929_s28 = smov 2   ;;  %s930_s11 = smov 18   ;;  %v1102_v10 = vld [vmem:[%s1078_s23] sm:$0xff] }
  0x38   : > { %541 = vmatprep.mubr.bf16.mxu0 %v928_v1  ;;  %825 = vset.pattern.permute.xlu1 %v928_v1  ;;  %s931_s12 = smov 16   ;;  %s932_s14 = smov 32   ;;  %v1106_v11 = vld [vmem:[%s1078_s23 + $0x8] sm:$0xf]  ;;  %vm307_vm6 = vcmask 15360   ;;  %vm363_vm8 = vcmask 146432  }
  0x39   : > { %826 = vset.pattern.permute.xlu0 %v928_v1  ;;  %v248_v3 = vadd.s32 128, %v247_v2  ;;  %v253_v4 = vand.u32 15, %v247_v2  ;;  %s933_s15 = smov 34   ;;  %s934_s25 = smov 127   ;;  %vm330_vm10 = vcmask 130048   ;;  %vm385_vm14 = vcmask 261120  }
  0x3a   : > { %s935_s26 = smov 111   ;;  %s936_s7 = smov 95   ;;  %v447_v48 = vld [vmem:[%s1216_s2] sm:$0xff] }
  0x3b   : > { %v260_v5 = vand.u32 15, %v248_v3  ;;  %vm275_vm0 = vcmp.ne.s32.totalorder %v253_v4, 15  ;;  %vm1084_vm1 = vcmp.ne.s32.totalorder %v253_v4, 0  ;;  %s937_s6 = smov 126   ;;  %s938_s8 = smov 112  }
  0x3c   : > { %s939_s9 = smov 110   ;;  %s940_s10 = smov 96  }
  0x3d   : > { %vm276_vm2 = vcmp.ne.s32.totalorder %v260_v5, 15  ;;  %vm1088_vm3 = vcmp.ne.s32.totalorder %v260_v5, 0  ;;  %s941_s16 = smov 94   ;;  %s644_s17 = scalar_lea.sflag [#allocation5], %s1074_s13 }
  0x3e   : > { %vm302_vm4 = vmpackc.low %vm276_vm2, %vm275_vm0  ;;  %vm418_vm2 = vcmask 277504   ;;  %p1235_p11 = scmp.ne.s32.totalorder %s1222_s29, 0 }
  0x3f   : > { %v303_v8 = vsel %vm302_vm4, 65537, %v928_v1  ;;  %vm281_vm5 = vmpackc.low %vm1088_vm3, %vm1084_vm1  ;;  %vm292_vm4 = vcmask 1043456   ;;  %vm322_vm1 = vcmask 1031168   ;;  %vm345_vm3 = vcmask 916480  }
  0x40   : > { %304 = vrot.lane.b32.xlu0 %v303_v8, %s929_s28  ;;  %360 = vrot.lane.b32.xlu1 %v303_v8, %s930_s11  ;;  %v326_v9 = vsel %vm281_vm5, 65537, %v928_v1  ;;  %v282_v39 = vsel %vm281_vm5, %v1102_v10, 0  ;;  %vm356_vm5 = vcmask 908288  }
  0x44   : > { %327 = vrot.lane.b32.xlu0 %v326_v9, %s931_s12  ;;  %382 = vrot.lane.b32.xlu1 %v326_v9, %s932_s14 }
  0x48   : > { %415 = vrot.lane.b32.xlu0 %v303_v8, %s933_s15  ;;  %286 = vrot.lane.b32.xlu1 %v1102_v10, %s934_s25 }
  0x4c   : > { %288 = vrot.lane.b32.xlu0 %v1106_v11, %s934_s25  ;;  %349 = vrot.lane.b32.xlu1 %v1102_v10, %s935_s26 }
  0x50   : > { %351 = vrot.lane.b32.xlu0 %v1106_v11, %s935_s26  ;;  %404 = vrot.lane.b32.xlu1 %v1102_v10, %s936_s7  ;;  %s733_s26 = sshll.u32 %s1074_s13, 4 }
  0x54   : > { %406 = vrot.lane.b32.xlu0 %v1106_v11, %s936_s7  ;;  %s752_s7 = sshll.u32 %s996_s22, 8  ;;  %s944_s22 = smov [#allocation6]  }
  0x55   : > { %s863_s28 = sshll.u32 %s944_s22, 4  ;;  %s864_s28 = int_to_ptr.vmem [resolvable:$false] %s863_s28 }
  0x56   : > { %s865_s11 = scalar_lea.vmem %s864_s28, 512 }
  0xb2   : > { %v305_v12 = vpop.permute.xlu0 %304  ;;  %v361_v13 = vpop.permute.xlu1 %360 }
  0xb3   : > { %v306_v14 = vrot.slane %v305_v12, 4  ;;  %v362_v15 = vrot.slane %v361_v13, 4 }
  0xb5   : > { %v308_v16 = vsel %vm307_vm6, %v306_v14, %v305_v12  ;;  %vm310_vm7 = vcmp.ne.s16.totalorder %v306_v14, 0  ;;  %v364_v22 = vsel %vm363_vm8, %v362_v15, %v361_v13  ;;  %vm1115_vm12 = vcmp.ne.s16.totalorder %v362_v15, 0 }
  0xb6   : > { %vm309_vm9 = vcmp.ne.s16.totalorder %v308_v16, 0  ;;  %v328_v17 = vpop.permute.xlu0 %327  ;;  %v312_v18 = vsel %vm310_vm7, %v1106_v11, 0  ;;  %v383_v19 = vpop.permute.xlu1 %382  ;;  %vm365_vm15 = vcmp.ne.s16.totalorder %v364_v22, 0  ;;  %v368_v30 = vsel %vm1115_vm12, %v1106_v11, 0 }
  0xb7   : > { %v329_v20 = vrot.slane %v328_v17, 4  ;;  %317 = vrot.lane.b32.xlu0 %v312_v18, %s937_s6  ;;  %v311_v21 = vsel %vm309_vm9, %v1102_v10, 0  ;;  %v384_v24 = vrot.slane %v383_v19, 4  ;;  %v367_v36 = vsel %vm365_vm15, %v1102_v10, 0 }
  0xb8   : > { %315 = vrot.lane.b32.xlu1 %v311_v21, %s937_s6  ;;  %vm294_vm6 = vcmask 1039360   ;;  %vm400_vm12 = vcmask 785408   ;;  %vm943_vm15 = vmmov 0   ;;  %s240_s6 = scalar_lea.vmem [#allocation6], %s733_s26 }
  0xb9   : > { %v331_v23 = vsel %vm330_vm10, %v329_v20, %v328_v17  ;;  %vm333_vm11 = vcmp.ne.s16.totalorder %v329_v20, 0  ;;  %v386_v31 = vsel %vm385_vm14, %v384_v24, %v383_v19  ;;  %vm1124_vm0 = vcmp.ne.s16.totalorder %v384_v24, 0 }
  0xba   : > { %vm332_vm13 = vcmp.ne.s16.totalorder %v331_v23, 0  ;;  %v335_v26 = vsel %vm333_vm11, %v1106_v11, 0  ;;  %v416_v27 = vpop.permute.xlu0 %415  ;;  %v287_v28 = vpop.permute.xlu1 %286  ;;  %vm387_vm7 = vcmp.ne.s16.totalorder %v386_v31, 0  ;;  %v390_v38 = vsel %vm1124_vm0, %v1106_v11, 0 }
  0xbb   : > { %340 = vrot.lane.b32.xlu0 %v335_v26, %s938_s8  ;;  %v334_v29 = vsel %vm332_vm13, %v1102_v10, 0  ;;  %v417_v32 = vrot.slane %v416_v27, 4  ;;  %v290_v34 = vrot.slane %v287_v28, 4  ;;  %v389_v43 = vsel %vm387_vm7, %v1102_v10, 0 }
  0xbc   : > { %338 = vrot.lane.b32.xlu1 %v334_v29, %s938_s8  ;;  %vm378_vm10 = vcmask 900096   ;;  %vm411_vm11 = vcmask 777216   ;;  %vm433_vm13 = vcmask 769024   ;;  %vm498_vm14 = vcmask 588800   ;;  %s658_s8 = sshll.u32 %s240_s6, 4  ;;  %s1172_s8 = int_to_ptr.vmem [resolvable:$true] %s658_s8 }
  0xbd   : > { %v419_v40 = vsel %vm418_vm2, %v417_v32, %v416_v27  ;;  %vm421_vm8 = vcmp.ne.s16.totalorder %v417_v32, 0  ;;  %vm559_vm0 = vcmask 64512   ;;  %s859_s23 = scalar_lea.vmem %s1172_s8, 256  ;;  %p866_p5 = scmp.lt.s32.totalorder %s1172_s8, %s864_s28 }
  0xbe   : > { %v289_v35 = vpop.permute.xlu0 %288  ;;  %vm420_vm9 = vcmp.ne.s16.totalorder %v419_v40, 0  ;;  %v423_v46 = vsel %vm421_vm8, %v1106_v11, 0  ;;  %v350_v50 = vpop.permute.xlu1 %349  ;;  %p860_p6 = scmp.ne.s32.totalorder %s1172_s8, %s859_s23  ;;  %p867_p10 = scmp.lt.s32.totalorder %s865_s11, %s859_s23 }
  0xbf   : > { %373 = vrot.lane.b32.xlu0 %v368_v30, %s939_s9  ;;  %v291_v37 = vrot.slane %v289_v35, 4  ;;  %v422_v47 = vsel %vm420_vm9, %v1102_v10, 0  ;;  %v353_v59 = vrot.slane %v350_v50, 4 }
  0xc0   : > { %371 = vrot.lane.b32.xlu1 %v367_v36, %s939_s9  ;;  %v437_v36 = vld [vmem:[%s1215_s1] sm:$0xf]  ;;  %p861_p12 = pnand %p860_p6, %p1235_p11  ;;  %p868_p2 = por %p867_p10, %p866_p5 }
  0xc1   : > { %v293_v41 = vsel %vm292_vm4, %v290_v34, %v291_v37 }
  0xc2   : > { %v295_v42 = vsel %vm294_vm6, %v287_v28, %v293_v41  ;;  %v352_v49 = vpop.permute.xlu0 %351  ;;  %v405_v52 = vpop.permute.xlu1 %404  ;;  %p862_p13 = pneg %p861_p12 }
  0xc3   : > { %395 = vrot.lane.b32.xlu0 %v390_v38, %s940_s10  ;;  %v735_v44 = vcombine.high %v282_v39, %v295_v42  ;;  %v734_v45 = vcombine.low %v282_v39, %v295_v42  ;;  %v354_v58 = vrot.slane %v352_v49, 4  ;;  %v408_v0 = vrot.slane %v405_v52, 4 }
  0xc4   : > { %393 = vrot.lane.b32.xlu1 %v389_v43, %s940_s10  ;;  %p869_p4 = pnand %p868_p2, %p862_p13 }
  0xc5   : > { %509 = vmatprep.subr.bf16.mxu0 %v735_v44  ;;  %v355_v3 = vsel %vm292_vm4, %v353_v59, %v354_v58 }
  0xc6   : > { %510 = vmatpush1.bf16.msra.mxu0 %v734_v45  ;;  %v407_v51 = vpop.permute.xlu0 %406  ;;  %v357_v14 = vsel %vm356_vm5, %v350_v50, %v355_v3  ;;  %v557_v50 = vld [vmem:[%s1217_s3] sm:$0xff] }
  0xc7   : > { %428 = vrot.lane.b32.xlu0 %v423_v46, %s941_s16  ;;  %v409_v8 = vrot.slane %v407_v51, 4  ;;  %v558_v51 = vld [vmem:[%s1218_s4] sm:$0xff] }
  0xc8   : > { %426 = vrot.lane.b32.xlu1 %v422_v47, %s941_s16  ;;  %v942_v47 = vmov 0.0   ;;  %s1170_s16 = scalar_lea.hbm %s1219_s5, %s752_s7 }
  0xc9   : > { %v410_v18 = vsel %vm292_vm4, %v408_v0, %v409_v8  ;;  %755 = vmatprep.subr.mxu1 %v942_v47  ;;  %757 = vmatprep.mubr.msk.f32.mxu1 %vm943_vm15, %v942_v47 }
  0xca   : > { %v412_v24 = vsel %vm411_vm11, %v405_v52, %v410_v18 }
  0xcc   : > { %450 = vperm.xlu1 %825, %v447_v48  }
 0x129   : > { %v318_v53 = vpop.permute.xlu0 %317 }
 0x12a   : > { %v316_v54 = vpop.permute.xlu1 %315  ;;  %v320_v55 = vrot.slane %v318_v53, 4 }
 0x12b   : > { %v319_v56 = vrot.slane %v316_v54, 4 }
 0x12d   : > { %v341_v57 = vpop.permute.xlu0 %340  ;;  %v321_v62 = vsel %vm292_vm4, %v319_v56, %v320_v55 }
 0x12e   : > { %v343_v60 = vrot.slane %v341_v57, 4  ;;  %v339_v61 = vpop.permute.xlu1 %338  ;;  %v323_v4 = vsel %vm322_vm1, %v316_v54, %v321_v62 }
 0x12f   : > { %v342_v63 = vrot.slane %v339_v61, 4 }
 0x131   : > { %v344_v1 = vsel %vm292_vm4, %v342_v63, %v343_v60  ;;  %v374_v2 = vpop.permute.xlu0 %373 }
 0x132   : > { %v346_v5 = vsel %vm345_vm3, %v339_v61, %v344_v1  ;;  %v376_v6 = vrot.slane %v374_v2, 4  ;;  %v372_v7 = vpop.permute.xlu1 %371 }
 0x133   : > { %v736_v9 = vcombine.low %v323_v4, %v346_v5  ;;  %v737_v10 = vcombine.high %v323_v4, %v346_v5  ;;  %v375_v11 = vrot.slane %v372_v7, 4 }
 0x135   : > { %v377_v12 = vsel %vm292_vm4, %v375_v11, %v376_v6  ;;  %v396_v13 = vpop.permute.xlu0 %395  ;;  %511 = vmatprep.subr.bf16.mxu0 %v737_v10 }
 0x136   : > { %v379_v15 = vsel %vm378_vm10, %v372_v7, %v377_v12  ;;  %v398_v16 = vrot.slane %v396_v13, 4  ;;  %v394_v17 = vpop.permute.xlu1 %393  ;;  %512 = vmatpush1.bf16.msra.mxu0 %v736_v9 }
 0x137   : > { %v738_v19 = vcombine.low %v357_v14, %v379_v15  ;;  %v739_v20 = vcombine.high %v357_v14, %v379_v15  ;;  %v397_v21 = vrot.slane %v394_v17, 4 }
 0x139   : > { %v399_v22 = vsel %vm292_vm4, %v397_v21, %v398_v16  ;;  %v429_v23 = vpop.permute.xlu0 %428  ;;  %513 = vmatprep.subr.bf16.mxu0 %v739_v20 }
 0x13a   : > { %v401_v25 = vsel %vm400_vm12, %v394_v17, %v399_v22  ;;  %v431_v26 = vrot.slane %v429_v23, 4  ;;  %v427_v27 = vpop.permute.xlu1 %426  ;;  %514 = vmatpush1.bf16.msra.mxu0 %v738_v19 }
 0x13b   : > { %v740_v28 = vcombine.low %v401_v25, %v412_v24  ;;  %v741_v29 = vcombine.high %v401_v25, %v412_v24  ;;  %v430_v30 = vrot.slane %v427_v27, 4 }
 0x13d   : > { %v432_v31 = vsel %vm292_vm4, %v430_v30, %v431_v26  ;;  %515 = vmatprep.subr.bf16.mxu0 %v741_v29 }
 0x13e   : > { %v434_v32 = vsel %vm433_vm13, %v427_v27, %v432_v31  ;;  %516 = vmatpush1.bf16.msra.mxu0 %v740_v28 }
 0x13f   : > { %v742_v33 = vcombine.low %v434_v32, %v434_v32  ;;  %v743_v34 = vcombine.high %v434_v32, %v434_v32 }
 0x141   : > { %744 = vmatprep.subr.msk.bf16.mxu0 %vm292_vm4, %v743_v34  ;;  %v504_v35 = vsel %vm292_vm4, %v742_v33, 0 }
 0x142   : > { %518 = vmatpush1.bf16.msra.mxu0 %v504_v35 }
 0x145   : > { %745 = vmatmul.mubr.msk.bf16.vlgmr.msra.gmra.mrb[0].mxu0 %vm498_vm14, %v437_v36 }
 0x14b   : > { %v451_v37 = vpop.permute.xlu1 %450 }
 0x218   : > { %v543_v38 = vpop.f32.mrb[0].mxu0 }
 0x219   : > { %v544_v39 = vadd.f32 %v543_v38, %v451_v37  ;;  %v545_v40 = vpop.f32.mrb[1].mxu0 }
 0x21a   : > { %v546_v41 = vadd.f32 %v545_v40, %v451_v37  ;;  %v547_v42 = vpop.f32.mrb[2].mxu0 }
 0x21b   : > { %v550_v43 = vand.u32 2147483647, %v544_v39  ;;  %v548_v44 = vpop.f32.mrb[3].mxu0 }
 0x21c   : > { %v551_v45 = vand.u32 2147483647, %v546_v41 }
 0x21e   : > { %v552_v46 = vadd.f32 %v551_v45, %v550_v43 }
 0x220   : > { %553 = vadd.xlane.f32.xlu0 %v552_v46 }
 0x2ad   : > { %v554_v48 = vpop.xlane.xlu0 %553 }
 0x2ae   : > { %v556_v49 = vmul.f32 0.00390625, %v554_v48 }
 0x2b0   : > { %756 = vmatpush3.msra.mxu1 %v556_v49 }
 0x2b1   : > { %758 = vmatmul.mubr.msk.f32.vlgmr.msra.gmra.mrb[0].mxu1 %vm559_vm0, %v557_v50 }
 0x384   : > { %v629_v52 = vpop.f32.mrb[0].mxu1 }
 0x385   : > { %v630_v53 = vadd.f32 %v629_v52, %v558_v51  ;;  %v759_v54 = vpop.f32.mrb[1].mxu1 }
 0x387   : > { %827 = vtanh.f32 %v630_v53 }
 0x391   : > { %v828_v55 = vpop.eup %827 }
 0x392   : > { %636 = vperm.xlu1 %825, %v828_v55  }
 0x411   : > { %v637_v56 = vpop.permute.xlu1 %636 }
 0x412   : > { %v639_v57 = vmul.f32 %v637_v56, %v544_v39  ;;  %v640_v58 = vmul.f32 %v637_v56, %v546_v41 }
 0x414   : > { %641 = vst [vmem:[%s240_s6] sm:$0xff] %v639_v57  ;;  %642 = vst [vmem:[%s240_s6 + $0x8] sm:$0xff] %v640_v58 }
 0x415   : > { %872 = shalt.err (!%p869_p4)
}
 0x416   : > { %s873_s13 = scalar_lea.hbm %s1170_s16, 256  ;;  %s877_s15 = scalar_lea.hbm %s1219_s5, 512 }
 0x417   : > { %p874_p7 = scmp.ne.s32.totalorder %s1170_s16, %s873_s13  ;;  %p878_p0 = scmp.lt.u32.totalorder %s1170_s16, %s1219_s5 }
 0x418   : > { %p879_p1 = scmp.lt.u32.totalorder %s877_s15, %s873_s13  ;;  %p881_p6 = scmp.lt.u32.totalorder %s873_s13, %s1170_s16 }
 0x419   : > { %p875_p8 = pnand %p874_p7, %p1235_p11 }
 0x41a   : > { %p880_p3 = por %p879_p1, %p878_p0 }
 0x41b   : > { %p876_p9 = pneg %p875_p8 }
 0x41c   : > { %p882_p12 = por %p881_p6, %p880_p3 }
 0x41e   : > { %p883_p13 = pnand %p882_p12, %p876_p9 }
 0x420   : > { %886 = shalt.err (!%p883_p13)
}
 0x421   : > { %765 = dma.vmem_to_hbm [thread:$0]  (%p1235_p11), %s1172_s8, 256, %s1170_s16, %s644_s17  }
 0x422 PF: > { %s670_s7 = sand.u32 1, %s913_s18   ;;  %p1236_p5 = scmp.ne.s32.totalorder %s1223_s30, 0 }
 0x423   : > { %p1237_p10 = scmp.ge.s32.totalorder %s925_s21, 2  ;;  %s671_s6 = scalar_lea.sflag [#allocation5], %s670_s7 }
 0x425   : > { %p772_p2 = pnand %p1237_p10, %p1236_p5 }
 0x427   : > { %908 = dma.done.wait (!%p772_p2), %s671_s6, 256  }
 0x428   : > { %910 = vsyncadd (!%p772_p2), %s671_s6, 4294967040  ;;  %p18_p4 = scmp.ge.s32.totalorder %s1000_s24, 4   ;;  %s1238_s18 = smov %s917_s19 }
 0x429   : > { %s1239_s19 = smov %s921_s20  ;;  %s1240_s20 = smov %s1012_s27 }
 0x42a   : > { %s1241_s21 = smov %s1000_s24  ;;  %20 = sbr.rel (!%p18_p4) target bundleno = 5 (0x5), region = 85 }
 0x431   :  { %676 = vsyncpa [#allocation4], 1 }
 0x432   :  { %678 = vsyncpa [#allocation4 + $0x1], 1 }
 0x433   :  { %679 = vsyncpa [#allocation5], 1 }
 0x434   :  { %681 = vsyncpa [#allocation5 + $0x1], 1 }

</bundles_post_ra>
